<compile_context>
chip_gen: v7x
topology: tpu7x:2x2x1
jax: 0.10.0
libtpu: 0.0.40
codegen_flags: <defaults>
</compile_context>

<pallas_src>
import functools

import jax
import jax.numpy as jnp
from jax.experimental import pallas as pl
from jax.experimental.pallas import tpu as pltpu

LN_EPS = 1e-5  # nn.LayerNorm default


def _round_up(v, m):
    return ((v + m - 1) // m) * m


def _patch_embed_kernel(xc_ref, w_ref, prm_ref, o_ref, *, inv_e):
    # xc_ref : (bm, K)       bf16 im2col tokens (K = C_in * p * p)
    # w_ref  : (K, E_pad)    bf16 flattened conv weight, zero-padded columns
    # prm_ref: (8, E_pad)    f32 packed params: rows [bias, gamma, beta, mask, 0..]
    # o_ref  : (bm, E_pad)   output tokens (lane-dense; pad columns write 0)
    prm = prm_ref[...]
    bias, gamma, beta, mask = prm[0:1], prm[1:2], prm[2:3], prm[3:4]

    # bf16 x bf16 -> f32 accumulation on the MXU (params pre-cast in wrapper).
    y = jnp.dot(xc_ref[...], w_ref[...], preferred_element_type=jnp.float32) + bias

    # LayerNorm over the *true* embedding dim: pad columns of y are exactly 0
    # (zero weight cols + zero bias), so they do not perturb the sum; the mask
    # keeps them out of the variance.
    mean = jnp.sum(y, axis=-1, keepdims=True) * inv_e
    c = y - mean
    cm = c * mask
    var = jnp.sum(cm * cm, axis=-1, keepdims=True) * inv_e
    yn = c * jax.lax.rsqrt(var + LN_EPS)
    o_ref[...] = (yn * gamma + beta).astype(o_ref.dtype)


def patch_embed_forward(x, w, b, gamma, beta, *, patch_size=4, block_m=4096,
                        out_dtype=jnp.bfloat16):
    """PatchEmbed forward.

    x     : (B, C_in, H, W)
    w     : (E, C_in, p, p)  Conv2d weight (torch layout)
    b     : (E,)             Conv2d bias
    gamma : (E,)             LayerNorm weight
    beta  : (E,)             LayerNorm bias
    returns (B, (H/p)*(W/p), E) in `out_dtype` (bf16 by default: the downstream
    Swin blocks consume bf16 and the writeback dominates HBM bytes).
    """
    B, C, H, W = x.shape
    p = patch_size
    assert H % p == 0 and W % p == 0, (
        f"Input image size ({H}*{W}) not divisible by patch size {p}.")
    E = w.shape[0]
    K = C * p * p
    Hp, Wp = H // p, W // p
    L = Hp * Wp
    rows = B * L
    E_pad = _round_up(E, 128)          # lane-dense output stores (e.g. 96 -> 128)

    # --- glue: im2col of non-overlapping patches, feature order (c, di, dj) ---
    # Matches the row-major flattening of the Conv2d weight (E, C, p, p).
    # Emitted directly in bf16 (the MXU input dtype) to halve that round trip.
    # TODO(synk): move this gather fully in-kernel (band BlockSpec + in-VMEM
    # shuffle) to remove the rows*K bf16 HBM round trip entirely.
    cols = x.reshape(B, C, Hp, p, Wp, p)
    cols = jnp.transpose(cols, (0, 2, 4, 1, 3, 5))        # (B, Hp, Wp, C, p, p)
    cols = cols.reshape(rows, K).astype(jnp.bfloat16)     # (B*L, K)

    # --- tiling: large token blocks (HBM-bound), sublane-rounded to 16, but
    # clamped so the grid has >= 2 steps (v7x has 2 TCs sharding "parallel"). ---
    bm = max(16, min(block_m, rows))
    bm = _round_up(bm, 16)
    if rows > 16:
        bm = min(bm, _round_up((rows + 1) // 2, 16))
    rows_padded = _round_up(rows, bm)
    if rows_padded != rows:
        cols = jnp.pad(cols, ((0, rows_padded - rows), (0, 0)))

    # --- parameters: pre-cast / pre-pack once; resident across the whole grid ---
    wk = jnp.asarray(w, jnp.float32).reshape(E, K).T                  # (K, E)
    wk = jnp.pad(wk, ((0, 0), (0, E_pad - E))).astype(jnp.bfloat16)   # (K, E_pad)
    prm = jnp.zeros((8, E_pad), jnp.float32)
    prm = prm.at[0, :E].set(jnp.asarray(b, jnp.float32))      # conv bias
    prm = prm.at[1, :E].set(jnp.asarray(gamma, jnp.float32))  # LN gamma
    prm = prm.at[2, :E].set(jnp.asarray(beta, jnp.float32))   # LN beta
    prm = prm.at[3, :E].set(1.0)                              # pad-column mask

    # --- explicit VMEM budget: double-buffered tiles + weight/params + f32
    # LayerNorm intermediates; never below the default scoped limit, and kept
    # under v7x's 64 MiB physical VMEM. ---
    out_bytes = jnp.dtype(out_dtype).itemsize
    need = (2 * (bm * K * 2 + bm * E_pad * out_bytes)
            + K * E_pad * 2 + 8 * E_pad * 4
            + 4 * bm * E_pad * 4          # f32 intermediates inside the body
            + (8 << 20))                  # headroom
    vmem_limit = int(min(max(need, 32 << 20), 48 << 20))

    out = pl.pallas_call(
        functools.partial(_patch_embed_kernel, inv_e=1.0 / E),
        out_shape=jax.ShapeDtypeStruct((rows_padded, E_pad), out_dtype),
        grid=(rows_padded // bm,),
        in_specs=[
            pl.BlockSpec((bm, K), lambda i: (i, 0)),      # token tile (contiguous DMA)
            pl.BlockSpec((K, E_pad), lambda i: (0, 0)),   # weight: constant block, resident
            pl.BlockSpec((8, E_pad), lambda i: (0, 0)),   # packed bias/gamma/beta/mask
        ],
        out_specs=pl.BlockSpec((bm, E_pad), lambda i: (i, 0)),
        compiler_params=pltpu.CompilerParams(
            dimension_semantics=("parallel",),            # megacore / dual-TC sharding
            vmem_limit_bytes=vmem_limit,
        ),
    )(cols, wk, prm)

    return out[:rows, :E].reshape(B, L, E)


def _reference_forward(x, w, b, gamma, beta, patch_size):
    """Pure-JAX f32 reference mirroring the PyTorch module."""
    B, C, H, W = x.shape
    p = patch_size
    E = w.shape[0]
    Hp, Wp = H // p, W // p
    cols = x.reshape(B, C, Hp, p, Wp, p)
    cols = jnp.transpose(cols, (0, 2, 4, 1, 3, 5)).reshape(B, Hp * Wp, C * p * p)
    y = jnp.einsum("blk,ek->ble", cols, w.reshape(E, -1),
                   precision=jax.lax.Precision.HIGHEST) + b
    mean = jnp.mean(y, axis=-1, keepdims=True)
    var = jnp.mean((y - mean) ** 2, axis=-1, keepdims=True)
    return (y - mean) / jnp.sqrt(var + LN_EPS) * gamma + beta


if __name__ == "__main__":
    # Small config consistent with the module: img 64x64, patch 4, in_chans 1,
    # and the Swin default embed_dim=96 (exercises the lane-dense E->128 padding
    # and masked-LayerNorm path).
    B, C, H, W = 2, 1, 64, 64
    p, E = 4, 96
    K = C * p * p

    key = jax.random.PRNGKey(0)
    kx, kw, kb, kg, kbt = jax.random.split(key, 5)

    x = jax.random.normal(kx, (B, C, H, W), dtype=jnp.float32)
    w = jax.random.normal(kw, (E, C, p, p), dtype=jnp.float32) * (1.0 / jnp.sqrt(K))
    b = jax.random.normal(kb, (E,), dtype=jnp.float32) * 0.1
    gamma = 1.0 + 0.1 * jax.random.normal(kg, (E,), dtype=jnp.float32)
    beta = 0.1 * jax.random.normal(kbt, (E,), dtype=jnp.float32)

    fwd = jax.jit(patch_embed_forward,
                  static_argnames=("patch_size", "block_m", "out_dtype"))
    out = fwd(x, w, b, gamma, beta, patch_size=p, block_m=4096)
    out = jax.block_until_ready(out)

    ref = _reference_forward(x, w, b, gamma, beta, p)
    assert out.shape == (B, (H // p) * (W // p), E)
    assert out.dtype == jnp.bfloat16
    err = jnp.abs(out.astype(jnp.float32) - ref)
    # bf16 MXU inputs + bf16 writeback vs f32 reference -> loosened elementwise
    # tolerance, plus a tight mean-error check that still catches any
    # layout/permutation/masking bug.
    assert jnp.allclose(out.astype(jnp.float32), ref, atol=1.5e-1, rtol=1.5e-1), \
        float(jnp.max(err))
    assert float(jnp.mean(err)) < 2e-2, float(jnp.mean(err))

    print("KERNEL_OK")
</pallas_src>

<mosaic_0001>
module attributes {stable_mosaic.version = 11 : i64} {
  func.func @_patch_embed_kernel(%arg0: i32, %arg1: memref<256x16xbf16, #tpu.memory_space<vmem>>, %arg2: memref<16x128xbf16, #tpu.memory_space<vmem>>, %arg3: memref<8x128xf32, #tpu.memory_space<vmem>>, %arg4: memref<256x128xbf16, #tpu.memory_space<vmem>>) attributes {dimension_semantics = [#tpu.dimension_semantics<parallel>], iteration_bounds = array<i64: 2>, scalar_prefetch = 0 : i64, scratch_operands = 0 : i64, tpu.core_type = #tpu.core_type<tc>, window_params = [{transform_indices = @transform_0, window_bounds = array<i64: 256, 16>}, {pipeline_mode = #tpu.pipeline_mode<synchronous>, transform_indices = @transform_1, window_bounds = array<i64: 16, 128>}, {pipeline_mode = #tpu.pipeline_mode<synchronous>, transform_indices = @transform_2, window_bounds = array<i64: 8, 128>}, {transform_indices = @transform_3, window_bounds = array<i64: 256, 128>}]} {
    %c0 = arith.constant 0 : index
    %c0_0 = arith.constant 0 : index
    %0 = vector.load %arg3[%c0, %c0_0] : memref<8x128xf32, #tpu.memory_space<vmem>>, vector<8x128xf32>
    %1 = vector.extract_strided_slice %0 {offsets = [0, 0], sizes = [1, 128], strides = [1, 1]} : vector<8x128xf32> to vector<1x128xf32>
    %2 = vector.extract_strided_slice %0 {offsets = [1, 0], sizes = [1, 128], strides = [1, 1]} : vector<8x128xf32> to vector<1x128xf32>
    %3 = vector.extract_strided_slice %0 {offsets = [2, 0], sizes = [1, 128], strides = [1, 1]} : vector<8x128xf32> to vector<1x128xf32>
    %4 = vector.extract_strided_slice %0 {offsets = [3, 0], sizes = [1, 128], strides = [1, 1]} : vector<8x128xf32> to vector<1x128xf32>
    %c0_1 = arith.constant 0 : index
    %c0_2 = arith.constant 0 : index
    %5 = vector.load %arg1[%c0_1, %c0_2] : memref<256x16xbf16, #tpu.memory_space<vmem>>, vector<256x16xbf16>
    %c0_3 = arith.constant 0 : index
    %c0_4 = arith.constant 0 : index
    %6 = vector.load %arg2[%c0_3, %c0_4] : memref<16x128xbf16, #tpu.memory_space<vmem>>, vector<16x128xbf16>
    %cst = arith.constant dense<0.000000e+00> : vector<256x128xf32>
    %7 = tpu.matmul %5, %6, %cst {dimension_numbers = #tpu.dot_dimension_numbers<[1], [0], [0], [1], [0, 0, 1, 1], [], []>} : vector<256x16xbf16>, vector<16x128xbf16>, vector<256x128xf32> -> vector<256x128xf32>
    %8 = vector.broadcast %1 : vector<1x128xf32> to vector<256x128xf32>
    %9 = arith.addf %7, %8 : vector<256x128xf32>
    %cst_5 = arith.constant dense<0.000000e+00> : vector<256xf32>
    %10 = vector.multi_reduction <add>, %9, %cst_5 [1] : vector<256x128xf32> to vector<256xf32>
    %11 = vector.shape_cast %10 : vector<256xf32> to vector<256x1xf32>
    %cst_6 = arith.constant 0.010416667 : f32
    %12 = vector.broadcast %cst_6 : f32 to vector<256x1xf32>
    %13 = arith.mulf %11, %12 : vector<256x1xf32>
    %14 = vector.broadcast %13 : vector<256x1xf32> to vector<256x128xf32>
    %15 = arith.subf %9, %14 : vector<256x128xf32>
    %16 = vector.broadcast %4 : vector<1x128xf32> to vector<256x128xf32>
    %17 = arith.mulf %15, %16 : vector<256x128xf32>
    %18 = arith.mulf %17, %17 : vector<256x128xf32>
    %cst_7 = arith.constant dense<0.000000e+00> : vector<256xf32>
    %19 = vector.multi_reduction <add>, %18, %cst_7 [1] : vector<256x128xf32> to vector<256xf32>
    %20 = vector.shape_cast %19 : vector<256xf32> to vector<256x1xf32>
    %cst_8 = arith.constant 0.010416667 : f32
    %21 = vector.broadcast %cst_8 : f32 to vector<256x1xf32>
    %22 = arith.mulf %20, %21 : vector<256x1xf32>
    %cst_9 = arith.constant 9.99999974E-6 : f32
    %23 = vector.broadcast %cst_9 : f32 to vector<256x1xf32>
    %24 = arith.addf %22, %23 : vector<256x1xf32>
    %25 = math.rsqrt %24 : vector<256x1xf32>
    %26 = vector.broadcast %25 : vector<256x1xf32> to vector<256x128xf32>
    %27 = arith.mulf %15, %26 : vector<256x128xf32>
    %28 = vector.broadcast %2 : vector<1x128xf32> to vector<256x128xf32>
    %29 = arith.mulf %27, %28 : vector<256x128xf32>
    %30 = vector.broadcast %3 : vector<1x128xf32> to vector<256x128xf32>
    %31 = arith.addf %29, %30 : vector<256x128xf32>
    %32 = arith.truncf %31 : vector<256x128xf32> to vector<256x128xbf16>
    %c0_10 = arith.constant 0 : index
    %c0_11 = arith.constant 0 : index
    %33 = vector.load %arg4[%c0_10, %c0_11] : memref<256x128xbf16, #tpu.memory_space<vmem>>, vector<256x128xbf16>
    tpu.vector_store %arg4[%c0_10, %c0_11], %32 {strides = array<i32>} : memref<256x128xbf16, #tpu.memory_space<vmem>>, vector<256x128xbf16>,
    return
  }
  func.func @transform_0(%arg0: i32) -> (i32, i32) {
    %c0_i32 = arith.constant 0 : i32
    %c0_i32_0 = arith.constant 0 : i32
    return %arg0, %c0_i32 : i32, i32
  }
  func.func @transform_1(%arg0: i32) -> (i32, i32) {
    %c0_i32 = arith.constant 0 : i32
    %c0_i32_0 = arith.constant 0 : i32
    %c0_i32_1 = arith.constant 0 : i32
    return %c0_i32, %c0_i32_0 : i32, i32
  }
  func.func @transform_2(%arg0: i32) -> (i32, i32) {
    %c0_i32 = arith.constant 0 : i32
    %c0_i32_0 = arith.constant 0 : i32
    %c0_i32_1 = arith.constant 0 : i32
    return %c0_i32, %c0_i32_0 : i32, i32
  }
  func.func @transform_3(%arg0: i32) -> (i32, i32) {
    %c0_i32 = arith.constant 0 : i32
    %c0_i32_0 = arith.constant 0 : i32
    return %arg0, %c0_i32 : i32, i32
  }
}

</mosaic_0001>

<bundles_post_ra>
// kernel: patch_embed_forward.1
= control target key start
LH: loop header
LB: loop body
LE: loop exit
PB: predicated region body
PF: predicated region fallthrough
CT: control target
= control target key end

     0   :  { %s1559_s12 = smov 0   ;;  %s2045_s0 = inlined_call_operand.vmem [shape: bf16[512,16], index: 0, kind: input, shape index: {}]   ;;  %s2046_s1 = inlined_call_operand.vmem [shape: bf16[16,128], index: 1, kind: input, shape index: {}]   ;;  %s2047_s2 = inlined_call_operand.vmem [shape: f32[8,128], index: 2, kind: input, shape index: {}]   ;;  %s2048_s3 = inlined_call_operand.vmem [shape: bf16[512,128], index: 3, kind: output, shape index: {}]  }
   0x1 LB: > { %s1186_s13 = sadd.s32 4294967295, %s1537_s12   ;;  %p1190_p0 = scmp.ge.s32.totalorder %s1537_s12, 1  ;;  %s1537_s12 = sphi %s1559_s12, %s13_s12  }
   0x2   : > { %p138_p1 = scmp.lt.s32.totalorder %s1537_s12, 3 }
   0x4   : > { %p139_p2 = pnand %p1190_p0, %p138_p1 }
   0x5   : > { %v1450_v0 = vld [vmem:[%s2046_s1] sm:$0xff] (!%p139_p2)   ;;  %s1191_s16 = sshll.u32 (!%p139_p2), %s1186_s13, 5  ;;  %vm300_vm0 = vcmask (!%p139_p2), 130048   ;;  %v210_v17 = vlaneseq (!%p139_p2) }
   0x6   : > { %142 = sbr.rel (%p139_p2) target bundleno = 613 (0x265), region = 32  ;;  %p163_p3 = scmp.lt.s32.totalorder (!%p139_p2), %s1191_s16, 63  ;;  %1406 = vmatprep.subr.bf16.mxu0 (!%p139_p2), %v1450_v0  ;;  %1440 = vmatprep.subr.bf16.mxu1 (!%p139_p2), %v1450_v0  ;;  %v1618_v20 = vld [vmem:[%s2047_s2] sm:$0xff] (!%p139_p2) }
   0x7   : > { %1407 = vmatpush3.bf16.msra.mxu0 (!%p139_p2), %v1450_v0  ;;  %1441 = vmatpush3.bf16.msra.mxu1 (!%p139_p2), %v1450_v0  ;;  %v1612_v18 = vshrl.u32 (!%p139_p2), %v210_v17, 7 }
   0x9   : > { %v212_v19 = vsub.s32 (!%p139_p2), 0, %v1612_v18 }
   0xb   : > { %v1621_v21 = vrot.slane (!%p139_p2), %v1618_v20, %v212_v19 }
   0xd   : > { %s2050_s16 = smov (!%p163_p3, %s1191_s16), 63 }
   0xe   : > { %s1192_s17 = sshll.u32 %s2050_s16, 2 }
   0xf   : > { %s1578_s20 = scalar_lea.vmem %s2045_s0, %s1192_s17  ;;  %s1937_s25 = scalar_lea.vmem %s2048_s3, %s1192_s17 }
  0x10   : > { %v1451_v1 = vld [vmem:[%s1578_s20] sm:$0xff]   ;;  %v1453_v3 = vld [vmem:[%s1578_s20 + $0x8] sm:$0xff]   ;;  %v1455_v5 = vld [vmem:[%s1578_s20 + $0x10] sm:$0xff]  }
  0x11   : > { %v1452_v2 = vld [vmem:[%s1578_s20 + $0x40] sm:$0xff]   ;;  %1408 = vmatprep.mubr.msk.bf16.mxu0 %vm300_vm0, %v1451_v1  ;;  %v1454_v4 = vld [vmem:[%s1578_s20 + $0x48] sm:$0xff]   ;;  %v1457_v6 = vld [vmem:[%s1578_s20 + $0x50] sm:$0xff]  }
  0x12   : > { %1424 = vmatprep.mubr.msk.bf16.mxu1 %vm300_vm0, %v1452_v2  ;;  %1409 = vmatmul.mubr.msk.bf16.vlgmr.msra.gmra.mrb[0].mxu0 %vm300_vm0, %v1453_v3  ;;  %v1456_v7 = vld [vmem:[%s1578_s20 + $0x18] sm:$0xff]   ;;  %v1459_v9 = vld [vmem:[%s1578_s20 + $0x20] sm:$0xff]   ;;  %v1460_v11 = vld [vmem:[%s1578_s20 + $0x28] sm:$0xff]  }
  0x13   : > { %1425 = vmatmul.mubr.msk.bf16.vlgmr.msra.gmra.mrb[0].mxu1 %vm300_vm0, %v1454_v4  ;;  %1412 = vmatprep.mubr.msk.bf16.mxu0 %vm300_vm0, %v1455_v5  ;;  %v1458_v8 = vld [vmem:[%s1578_s20 + $0x58] sm:$0xff]   ;;  %v1461_v10 = vld [vmem:[%s1578_s20 + $0x60] sm:$0xff]   ;;  %v1462_v12 = vld [vmem:[%s1578_s20 + $0x68] sm:$0xff]  }
  0x14   : > { %1428 = vmatprep.mubr.msk.bf16.mxu1 %vm300_vm0, %v1457_v6  ;;  %v1463_v13 = vld [vmem:[%s1578_s20 + $0x30] sm:$0xff]   ;;  %v1464_v15 = vld [vmem:[%s1578_s20 + $0x38] sm:$0xff]  }
  0x15   : > { %v1465_v14 = vld [vmem:[%s1578_s20 + $0x70] sm:$0xff]   ;;  %v1466_v16 = vld [vmem:[%s1578_s20 + $0x78] sm:$0xff]  }
  0x1a   : > { %1413 = vmatmul.mubr.msk.bf16.gmra.mrb[4].mxu0 %vm300_vm0, %v1456_v7 }
  0x1b   : > { %1429 = vmatmul.mubr.msk.bf16.gmra.mrb[4].mxu1 %vm300_vm0, %v1458_v8  ;;  %1416 = vmatprep.mubr.msk.bf16.mxu0 %vm300_vm0, %v1459_v9 }
  0x1c   : > { %1432 = vmatprep.mubr.msk.bf16.mxu1 %vm300_vm0, %v1461_v10 }
  0x22   : > { %1417 = vmatmul.mubr.msk.bf16.gmra.mrb[8].mxu0 %vm300_vm0, %v1460_v11 }
  0x23   : > { %1433 = vmatmul.mubr.msk.bf16.gmra.mrb[8].mxu1 %vm300_vm0, %v1462_v12  ;;  %1420 = vmatprep.mubr.msk.bf16.mxu0 %vm300_vm0, %v1463_v13 }
  0x24   : > { %1436 = vmatprep.mubr.msk.bf16.mxu1 %vm300_vm0, %v1465_v14 }
  0x2a   : > { %1421 = vmatmul.mubr.msk.bf16.gmra.mrb[12].mxu0 %vm300_vm0, %v1464_v15 }
  0x2b   : > { %1437 = vmatmul.mubr.msk.bf16.gmra.mrb[12].mxu1 %vm300_vm0, %v1466_v16 }
  0xe5   : > { %v1410_v22 = vpop.f32.mrb[0].mxu0 }
  0xe6   : > { %v1624_v23 = vadd.f32 %v1410_v22, %v1621_v21  ;;  %v1426_v24 = vpop.f32.mrb[0].mxu1  ;;  %v383_v25 = vpop.f32.mrb[1].mxu0 }
  0xe7   : > { %v1627_v26 = vadd.f32 %v1426_v24, %v1621_v21  ;;  %v447_v27 = vpop.f32.mrb[1].mxu1  ;;  %v1411_v28 = vpop.f32.mrb[2].mxu0  ;;  %v1635_v33 = vadd.f32 %v383_v25, %v1621_v21 }
  0xe8   : > { %v1427_v29 = vpop.f32.mrb[2].mxu1  ;;  %514 = vadd.xlane.f32.xlu1 %v1624_v23  ;;  %v386_v30 = vpop.f32.mrb[3].mxu0  ;;  %v1632_v32 = vadd.f32 %v1411_v28, %v1621_v21  ;;  %v1643_v38 = vadd.f32 %v447_v27, %v1621_v21  ;;  %v640_v27 = vsub.s32 3, %v1612_v18 }
  0xe9   : > { %546 = vadd.xlane.f32.xlu0 %v1627_v26  ;;  %v450_v31 = vpop.f32.mrb[3].mxu1  ;;  %v1640_v35 = vadd.f32 %v1427_v29, %v1621_v21  ;;  %v1651_v45 = vadd.f32 %v386_v30, %v1621_v21 }
  0xea   : > { %v1648_v44 = vadd.f32 %v450_v31, %v1621_v21  ;;  %v1753_v31 = vrot.slane %v1618_v20, %v640_v27 }
  0xec   : > { %516 = vadd.xlane.f32.xlu1 %v1632_v32 }
  0xed   : > { %510 = vadd.xlane.f32.xlu0 %v1635_v33  ;;  %v1414_v34 = vpop.f32.mrb[4].mxu0 }
  0xee   : > { %v399_v36 = vpop.f32.mrb[5].mxu0  ;;  %v1430_v37 = vpop.f32.mrb[4].mxu1  ;;  %v1658_v47 = vadd.f32 %v1414_v34, %v1621_v21 }
  0xef   : > { %v1415_v39 = vpop.f32.mrb[6].mxu0  ;;  %v463_v40 = vpop.f32.mrb[5].mxu1  ;;  %v1666_v56 = vadd.f32 %v1430_v37, %v1621_v21  ;;  %v1675_v62 = vadd.f32 %v399_v36, %v1621_v21 }
  0xf0   : > { %548 = vadd.xlane.f32.xlu1 %v1640_v35  ;;  %v402_v41 = vpop.f32.mrb[7].mxu0  ;;  %v1431_v42 = vpop.f32.mrb[6].mxu1  ;;  %v1655_v46 = vadd.f32 %v1415_v39, %v1621_v21  ;;  %v1683_v5 = vadd.f32 %v463_v40, %v1621_v21 }
  0xf1   : > { %542 = vadd.xlane.f32.xlu0 %v1643_v38  ;;  %v466_v43 = vpop.f32.mrb[7].mxu1  ;;  %v1663_v53 = vadd.f32 %v1431_v42, %v1621_v21  ;;  %v1672_v59 = vadd.f32 %v402_v41, %v1621_v21 }
  0xf2   : > { %v1680_v4 = vadd.f32 %v466_v43, %v1621_v21 }
  0xf4   : > { %544 = vadd.xlane.f32.xlu1 %v1648_v44 }
  0xf5   : > { %512 = vadd.xlane.f32.xlu0 %v1651_v45  ;;  %v1418_v48 = vpop.f32.mrb[8].mxu0 }
  0xf6   : > { %v415_v49 = vpop.f32.mrb[9].mxu0  ;;  %v1434_v50 = vpop.f32.mrb[8].mxu1  ;;  %v1690_v7 = vadd.f32 %v1418_v48, %v1621_v21 }
  0xf7   : > { %v1419_v51 = vpop.f32.mrb[10].mxu0  ;;  %v479_v52 = vpop.f32.mrb[9].mxu1  ;;  %v1698_v9 = vadd.f32 %v1434_v50, %v1621_v21  ;;  %v1707_v11 = vadd.f32 %v415_v49, %v1621_v21 }
  0xf8   : > { %524 = vadd.xlane.f32.xlu1 %v1655_v46  ;;  %v418_v54 = vpop.f32.mrb[11].mxu0  ;;  %v1435_v55 = vpop.f32.mrb[10].mxu1  ;;  %v1687_v6 = vadd.f32 %v1419_v51, %v1621_v21  ;;  %v1715_v13 = vadd.f32 %v479_v52, %v1621_v21 }
  0xf9   : > { %522 = vadd.xlane.f32.xlu0 %v1658_v47  ;;  %v482_v57 = vpop.f32.mrb[11].mxu1  ;;  %v1695_v8 = vadd.f32 %v1435_v55, %v1621_v21  ;;  %v1704_v10 = vadd.f32 %v418_v54, %v1621_v21 }
  0xfa   : > { %v1712_v12 = vadd.f32 %v482_v57, %v1621_v21 }
  0xfc   : > { %556 = vadd.xlane.f32.xlu1 %v1663_v53 }
  0xfd   : > { %554 = vadd.xlane.f32.xlu0 %v1666_v56  ;;  %v1422_v58 = vpop.f32.mrb[12].mxu0 }
  0xfe   : > { %v431_v60 = vpop.f32.mrb[13].mxu0  ;;  %v1438_v61 = vpop.f32.mrb[12].mxu1  ;;  %v1722_v15 = vadd.f32 %v1422_v58, %v1621_v21 }
  0xff   : > { %v1423_v63 = vpop.f32.mrb[14].mxu0  ;;  %v495_v0 = vpop.f32.mrb[13].mxu1  ;;  %v1731_v17 = vadd.f32 %v431_v60, %v1621_v21  ;;  %v1747_v25 = vadd.f32 %v1438_v61, %v1621_v21 }
 0x100   : > { %520 = vadd.xlane.f32.xlu1 %v1672_v59  ;;  %v434_v1 = vpop.f32.mrb[15].mxu0  ;;  %v1439_v2 = vpop.f32.mrb[14].mxu1  ;;  %v1719_v14 = vadd.f32 %v1423_v63, %v1621_v21  ;;  %v1738_v22 = vadd.f32 %v495_v0, %v1621_v21 }
 0x101   : > { %518 = vadd.xlane.f32.xlu0 %v1675_v62  ;;  %v498_v3 = vpop.f32.mrb[15].mxu1  ;;  %v1728_v16 = vadd.f32 %v434_v1, %v1621_v21  ;;  %v1744_v24 = vadd.f32 %v1439_v2, %v1621_v21 }
 0x102   : > { %v1735_v19 = vadd.f32 %v498_v3, %v1621_v21 }
 0x104   : > { %552 = vadd.xlane.f32.xlu1 %v1680_v4 }
 0x105   : > { %550 = vadd.xlane.f32.xlu0 %v1683_v5 }
 0x108   : > { %532 = vadd.xlane.f32.xlu1 %v1687_v6 }
 0x109   : > { %530 = vadd.xlane.f32.xlu0 %v1690_v7 }
 0x10c   : > { %564 = vadd.xlane.f32.xlu1 %v1695_v8 }
 0x10d   : > { %562 = vadd.xlane.f32.xlu0 %v1698_v9 }
 0x110   : > { %528 = vadd.xlane.f32.xlu1 %v1704_v10 }
 0x111   : > { %526 = vadd.xlane.f32.xlu0 %v1707_v11 }
 0x114   : > { %560 = vadd.xlane.f32.xlu1 %v1712_v12 }
 0x115   : > { %558 = vadd.xlane.f32.xlu0 %v1715_v13 }
 0x118   : > { %540 = vadd.xlane.f32.xlu1 %v1719_v14 }
 0x119   : > { %538 = vadd.xlane.f32.xlu0 %v1722_v15 }
 0x11c   : > { %536 = vadd.xlane.f32.xlu1 %v1728_v16 }
 0x11d   : > { %534 = vadd.xlane.f32.xlu0 %v1731_v17 }
 0x120   : > { %568 = vadd.xlane.f32.xlu1 %v1735_v19 }
 0x121   : > { %566 = vadd.xlane.f32.xlu0 %v1738_v22 }
 0x124   : > { %572 = vadd.xlane.f32.xlu1 %v1744_v24 }
 0x125   : > { %570 = vadd.xlane.f32.xlu0 %v1747_v25 }
 0x175   : > { %v515_v28 = vpop.xlane.xlu1 %514 }
 0x176   : > { %v547_v29 = vpop.xlane.xlu0 %546  ;;  %v576_v30 = vmul.f32 0.010416667, %v515_v28 }
 0x177   : > { %v592_v34 = vmul.f32 0.010416667, %v547_v29 }
 0x178   : > { %v1756_v36 = vsub.f32 %v1624_v23, %v576_v30 }
 0x179   : > { %v1759_v37 = vsub.f32 %v1627_v26, %v592_v34  ;;  %v517_v21 = vpop.xlane.xlu1 %516 }
 0x17a   : > { %v577_v39 = vmul.f32 0.010416667, %v517_v21  ;;  %v511_v40 = vpop.xlane.xlu0 %510  ;;  %v644_v41 = vmul.f32 %v1753_v31, %v1756_v36 }
 0x17b   : > { %v574_v42 = vmul.f32 0.010416667, %v511_v40  ;;  %v660_v49 = vmul.f32 %v1753_v31, %v1759_v37 }
 0x17c   : > { %v1764_v43 = vsub.f32 %v1632_v32, %v577_v39  ;;  %v676_v48 = vmul.f32 %v644_v41, %v644_v41 }
 0x17d   : > { %v1769_v23 = vsub.f32 %v1635_v33, %v574_v42  ;;  %v549_v50 = vpop.xlane.xlu1 %548  ;;  %v692_v57 = vmul.f32 %v660_v49, %v660_v49 }
 0x17e   : > { %v593_v26 = vmul.f32 0.010416667, %v549_v50  ;;  %v543_v51 = vpop.xlane.xlu0 %542  ;;  %710 = vadd.xlane.f32.xlu0 %v676_v48  ;;  %v645_v52 = vmul.f32 %v1753_v31, %v1764_v43 }
 0x17f   : > { %v590_v54 = vmul.f32 0.010416667, %v543_v51  ;;  %v642_v58 = vmul.f32 %v1753_v31, %v1769_v23 }
 0x180   : > { %v1774_v55 = vsub.f32 %v1640_v35, %v593_v26  ;;  %v677_v32 = vmul.f32 %v645_v52, %v645_v52 }
 0x181   : > { %v1779_v60 = vsub.f32 %v1643_v38, %v590_v54  ;;  %v545_v33 = vpop.xlane.xlu1 %544  ;;  %v674_v35 = vmul.f32 %v642_v58, %v642_v58 }
 0x182   : > { %v591_v61 = vmul.f32 0.010416667, %v545_v33  ;;  %v513_v63 = vpop.xlane.xlu0 %512  ;;  %712 = vadd.xlane.f32.xlu1 %v677_v32  ;;  %742 = vadd.xlane.f32.xlu0 %v692_v57  ;;  %v661_v0 = vmul.f32 %v1753_v31, %v1774_v55 }
 0x183   : > { %v575_v1 = vmul.f32 0.010416667, %v513_v63  ;;  %v658_v3 = vmul.f32 %v1753_v31, %v1779_v60 }
 0x184   : > { %v693_v2 = vmul.f32 %v661_v0, %v661_v0  ;;  %v1786_v27 = vsub.f32 %v1648_v44, %v591_v61 }
 0x185   : > { %v1789_v38 = vsub.f32 %v1651_v45, %v575_v1  ;;  %v525_v28 = vpop.xlane.xlu1 %524  ;;  %v690_v40 = vmul.f32 %v658_v3, %v658_v3 }
 0x186   : > { %v581_v29 = vmul.f32 0.010416667, %v525_v28  ;;  %v523_v30 = vpop.xlane.xlu0 %522  ;;  %744 = vadd.xlane.f32.xlu1 %v693_v2  ;;  %706 = vadd.xlane.f32.xlu0 %v674_v35  ;;  %v659_v45 = vmul.f32 %v1753_v31, %v1786_v27 }
 0x187   : > { %v580_v34 = vmul.f32 0.010416667, %v523_v30  ;;  %v643_v21 = vmul.f32 %v1753_v31, %v1789_v38 }
 0x188   : > { %v1794_v39 = vsub.f32 %v1655_v46, %v581_v29  ;;  %v691_v54 = vmul.f32 %v659_v45, %v659_v45 }
 0x189   : > { %v1797_v41 = vsub.f32 %v1658_v47, %v580_v34  ;;  %v557_v44 = vpop.xlane.xlu1 %556  ;;  %v675_v42 = vmul.f32 %v643_v21, %v643_v21 }
 0x18a   : > { %v597_v48 = vmul.f32 0.010416667, %v557_v44  ;;  %v555_v49 = vpop.xlane.xlu0 %554  ;;  %738 = vadd.xlane.f32.xlu0 %v690_v40  ;;  %v649_v46 = vmul.f32 %v1753_v31, %v1794_v39 }
 0x18b   : > { %v596_v50 = vmul.f32 0.010416667, %v555_v49  ;;  %708 = vadd.xlane.f32.xlu1 %v675_v42  ;;  %v648_v26 = vmul.f32 %v1753_v31, %v1797_v41 }
 0x18c   : > { %v1806_v51 = vsub.f32 %v1663_v53, %v597_v48  ;;  %v681_v63 = vmul.f32 %v649_v46, %v649_v46 }
 0x18d   : > { %v1809_v47 = vsub.f32 %v1666_v56, %v596_v50  ;;  %v521_v52 = vpop.xlane.xlu1 %520  ;;  %v680_v32 = vmul.f32 %v648_v26, %v648_v26 }
 0x18e   : > { %v579_v57 = vmul.f32 0.010416667, %v521_v52  ;;  %v519_v58 = vpop.xlane.xlu0 %518  ;;  %v665_v2 = vmul.f32 %v1753_v31, %v1806_v51 }
 0x18f   : > { %v578_v33 = vmul.f32 0.010416667, %v519_v58  ;;  %740 = vadd.xlane.f32.xlu1 %v691_v54  ;;  %718 = vadd.xlane.f32.xlu0 %v680_v32  ;;  %v664_v61 = vmul.f32 %v1753_v31, %v1809_v47 }
 0x190   : > { %v1814_v0 = vsub.f32 %v1672_v59, %v579_v57  ;;  %v697_v34 = vmul.f32 %v665_v2, %v665_v2 }
 0x191   : > { %v1817_v53 = vsub.f32 %v1675_v62, %v578_v33  ;;  %v553_v56 = vpop.xlane.xlu1 %552  ;;  %v696_v1 = vmul.f32 %v664_v61, %v664_v61 }
 0x192   : > { %v595_v35 = vmul.f32 0.010416667, %v553_v56  ;;  %v551_v3 = vpop.xlane.xlu0 %550  ;;  %v647_v40 = vmul.f32 %v1753_v31, %v1814_v0 }
 0x193   : > { %v594_v28 = vmul.f32 0.010416667, %v551_v3  ;;  %720 = vadd.xlane.f32.xlu1 %v681_v63  ;;  %750 = vadd.xlane.f32.xlu0 %v696_v1  ;;  %v646_v29 = vmul.f32 %v1753_v31, %v1817_v53 }
 0x194   : > { %v1824_v30 = vsub.f32 %v1680_v4, %v595_v35  ;;  %v679_v26 = vmul.f32 %v647_v40, %v647_v40 }
 0x195   : > { %v1827_v59 = vsub.f32 %v1683_v5, %v594_v28  ;;  %v533_v62 = vpop.xlane.xlu1 %532  ;;  %v678_v21 = vmul.f32 %v646_v29, %v646_v29 }
 0x196   : > { %v585_v44 = vmul.f32 0.010416667, %v533_v62  ;;  %v531_v42 = vpop.xlane.xlu0 %530  ;;  %v663_v4 = vmul.f32 %v1753_v31, %v1824_v30 }
 0x197   : > { %v584_v45 = vmul.f32 0.010416667, %v531_v42  ;;  %752 = vadd.xlane.f32.xlu1 %v697_v34  ;;  %714 = vadd.xlane.f32.xlu0 %v678_v21  ;;  %v662_v48 = vmul.f32 %v1753_v31, %v1827_v59 }
 0x198   : > { %v1836_v5 = vsub.f32 %v1687_v6, %v585_v44  ;;  %v695_v58 = vmul.f32 %v663_v4, %v663_v4 }
 0x199   : > { %v1839_v49 = vsub.f32 %v1690_v7, %v584_v45  ;;  %v565_v50 = vpop.xlane.xlu1 %564  ;;  %v694_v46 = vmul.f32 %v662_v48, %v662_v48 }
 0x19a   : > { %v601_v52 = vmul.f32 0.010416667, %v565_v50  ;;  %v563_v54 = vpop.xlane.xlu0 %562  ;;  %v653_v63 = vmul.f32 %v1753_v31, %v1836_v5 }
 0x19b   : > { %v600_v32 = vmul.f32 0.010416667, %v563_v54  ;;  %716 = vadd.xlane.f32.xlu1 %v679_v26  ;;  %746 = vadd.xlane.f32.xlu0 %v694_v46  ;;  %v652_v57 = vmul.f32 %v1753_v31, %v1839_v49 }
 0x19c   : > { %v1844_v33 = vsub.f32 %v1695_v8, %v601_v52  ;;  %v685_v28 = vmul.f32 %v653_v63, %v653_v63 }
 0x19d   : > { %v1847_v6 = vsub.f32 %v1698_v9, %v600_v32  ;;  %v529_v7 = vpop.xlane.xlu1 %528  ;;  %v684_v61 = vmul.f32 %v652_v57, %v652_v57 }
 0x19e   : > { %v583_v56 = vmul.f32 0.010416667, %v529_v7  ;;  %v527_v1 = vpop.xlane.xlu0 %526  ;;  %v669_v62 = vmul.f32 %v1753_v31, %v1844_v33 }
 0x19f   : > { %v582_v2 = vmul.f32 0.010416667, %v527_v1  ;;  %748 = vadd.xlane.f32.xlu1 %v695_v58  ;;  %726 = vadd.xlane.f32.xlu0 %v684_v61  ;;  %v668_v35 = vmul.f32 %v1753_v31, %v1847_v6 }
 0x1a0   : > { %v1854_v3 = vsub.f32 %v1704_v10, %v583_v56  ;;  %v701_v48 = vmul.f32 %v669_v62, %v669_v62 }
 0x1a1   : > { %v1857_v8 = vsub.f32 %v1707_v11, %v582_v2  ;;  %v561_v9 = vpop.xlane.xlu1 %560  ;;  %v700_v29 = vmul.f32 %v668_v35, %v668_v35 }
 0x1a2   : > { %v599_v34 = vmul.f32 0.010416667, %v561_v9  ;;  %v559_v21 = vpop.xlane.xlu0 %558  ;;  %v651_v10 = vmul.f32 %v1753_v31, %v1854_v3 }
 0x1a3   : > { %v598_v40 = vmul.f32 0.010416667, %v559_v21  ;;  %728 = vadd.xlane.f32.xlu1 %v685_v28  ;;  %758 = vadd.xlane.f32.xlu0 %v700_v29  ;;  %v650_v44 = vmul.f32 %v1753_v31, %v1857_v8 }
 0x1a4   : > { %v1866_v11 = vsub.f32 %v1712_v12, %v599_v34  ;;  %v683_v54 = vmul.f32 %v651_v10, %v651_v10 }
 0x1a5   : > { %v1869_v42 = vsub.f32 %v1715_v13, %v598_v40  ;;  %v541_v45 = vpop.xlane.xlu1 %540  ;;  %v682_v4 = vmul.f32 %v650_v44, %v650_v44 }
 0x1a6   : > { %v589_v50 = vmul.f32 0.010416667, %v541_v45  ;;  %v539_v26 = vpop.xlane.xlu0 %538  ;;  %v667_v58 = vmul.f32 %v1753_v31, %v1866_v11 }
 0x1a7   : > { %v588_v46 = vmul.f32 0.010416667, %v539_v26  ;;  %760 = vadd.xlane.f32.xlu1 %v701_v48  ;;  %722 = vadd.xlane.f32.xlu0 %v682_v4  ;;  %v666_v52 = vmul.f32 %v1753_v31, %v1869_v42 }
 0x1a8   : > { %v1874_v32 = vsub.f32 %v1719_v14, %v589_v50  ;;  %v699_v2 = vmul.f32 %v667_v58, %v667_v58 }
 0x1a9   : > { %v1877_v12 = vsub.f32 %v1722_v15, %v588_v46  ;;  %v537_v13 = vpop.xlane.xlu1 %536  ;;  %v698_v57 = vmul.f32 %v666_v52, %v666_v52 }
 0x1aa   : > { %v587_v7 = vmul.f32 0.010416667, %v537_v13  ;;  %v535_v61 = vpop.xlane.xlu0 %534  ;;  %v657_v9 = vmul.f32 %v1753_v31, %v1874_v32 }
 0x1ab   : > { %v586_v63 = vmul.f32 0.010416667, %v535_v61  ;;  %724 = vadd.xlane.f32.xlu1 %v683_v54  ;;  %754 = vadd.xlane.f32.xlu0 %v698_v57  ;;  %v656_v56 = vmul.f32 %v1753_v31, %v1877_v12 }
 0x1ac   : > { %v1884_v1 = vsub.f32 %v1728_v16, %v587_v7  ;;  %v689_v44 = vmul.f32 %v657_v9, %v657_v9 }
 0x1ad   : > { %v1887_v14 = vsub.f32 %v1731_v17, %v586_v63  ;;  %v569_v15 = vpop.xlane.xlu1 %568  ;;  %v688_v35 = vmul.f32 %v656_v56, %v656_v56 }
 0x1ae   : > { %v603_v28 = vmul.f32 0.010416667, %v569_v15  ;;  %v567_v29 = vpop.xlane.xlu0 %566  ;;  %v655_v16 = vmul.f32 %v1753_v31, %v1884_v1 }
 0x1af   : > { %v602_v62 = vmul.f32 0.010416667, %v567_v29  ;;  %756 = vadd.xlane.f32.xlu1 %v699_v2  ;;  %734 = vadd.xlane.f32.xlu0 %v688_v35  ;;  %v654_v34 = vmul.f32 %v1753_v31, %v1887_v14 }
 0x1b0   : > { %v1896_v17 = vsub.f32 %v1735_v19, %v603_v28  ;;  %v687_v26 = vmul.f32 %v655_v16, %v655_v16 }
 0x1b1   : > { %v1899_v21 = vsub.f32 %v1738_v22, %v602_v62  ;;  %v573_v40 = vpop.xlane.xlu1 %572  ;;  %v686_v10 = vmul.f32 %v654_v34, %v654_v34 }
 0x1b2   : > { %v605_v45 = vmul.f32 0.010416667, %v573_v40  ;;  %v571_v48 = vpop.xlane.xlu0 %570  ;;  %v671_v52 = vmul.f32 %v1753_v31, %v1896_v17 }
 0x1b3   : > { %v604_v4 = vmul.f32 0.010416667, %v571_v48  ;;  %736 = vadd.xlane.f32.xlu1 %v689_v44  ;;  %730 = vadd.xlane.f32.xlu0 %v686_v10  ;;  %v670_v50 = vmul.f32 %v1753_v31, %v1899_v21 }
 0x1b4   : > { %v1904_v46 = vsub.f32 %v1744_v24, %v605_v45  ;;  %v703_v13 = vmul.f32 %v671_v52, %v671_v52 }
 0x1b5   : > { %v1907_v19 = vsub.f32 %v1747_v25, %v604_v4  ;;  %v702_v22 = vmul.f32 %v670_v50, %v670_v50 }
 0x1b6   : > { %v673_v58 = vmul.f32 %v1753_v31, %v1904_v46 }
 0x1b7   : > { %732 = vadd.xlane.f32.xlu1 %v687_v26  ;;  %762 = vadd.xlane.f32.xlu0 %v702_v22  ;;  %v672_v54 = vmul.f32 %v1753_v31, %v1907_v19  ;;  %v900_v31 = vsub.s32 1, %v1612_v18  ;;  %v936_v26 = vsub.s32 2, %v1612_v18 }
 0x1b8   : > { %v705_v24 = vmul.f32 %v673_v58, %v673_v58 }
 0x1b9   : > { %v704_v57 = vmul.f32 %v672_v54, %v672_v54  ;;  %v1917_v50 = vrot.slane %v1618_v20, %v900_v31 }
 0x1bb   : > { %764 = vadd.xlane.f32.xlu1 %v703_v13  ;;  %766 = vadd.xlane.f32.xlu0 %v704_v57 }
 0x1bf   : > { %768 = vadd.xlane.f32.xlu1 %v705_v24 }
 0x20b   : > { %v711_v25 = vpop.xlane.xlu0 %710 }
 0x20c   : > { %v772_v7 = vmul.f32 0.010416667, %v711_v25 }
 0x20e   : > { %v804_v61 = vadd.f32 1e-05, %v772_v7  ;;  %v1922_v7 = vrot.slane %v1618_v20, %v936_v26 }
 0x20f   : > { %v713_v63 = vpop.xlane.xlu1 %712  ;;  %v743_v56 = vpop.xlane.xlu0 %742 }
 0x210   : > { %1467 = vrsqrt.f32 %v804_v61  ;;  %v773_v15 = vmul.f32 0.010416667, %v713_v63  ;;  %v788_v2 = vmul.f32 0.010416667, %v743_v56 }
 0x212   : > { %v805_v35 = vadd.f32 1e-05, %v773_v15  ;;  %v820_v9 = vadd.f32 1e-05, %v788_v2 }
 0x213   : > { %v745_v28 = vpop.xlane.xlu1 %744  ;;  %v707_v29 = vpop.xlane.xlu0 %706 }
 0x214   : > { %1469 = vrsqrt.f32 %v805_v35  ;;  %v789_v62 = vmul.f32 0.010416667, %v745_v28  ;;  %v770_v34 = vmul.f32 0.010416667, %v707_v29 }
 0x215   : > { %1471 = vrsqrt.f32 %v820_v9 }
 0x216   : > { %v821_v16 = vadd.f32 1e-05, %v789_v62  ;;  %v802_v40 = vadd.f32 1e-05, %v770_v34 }
 0x217   : > { %v739_v44 = vpop.xlane.xlu0 %738 }
 0x218   : > { %1473 = vrsqrt.f32 %v821_v16  ;;  %v709_v10 = vpop.xlane.xlu1 %708  ;;  %v786_v45 = vmul.f32 0.010416667, %v739_v44 }
 0x219   : > { %1475 = vrsqrt.f32 %v802_v40  ;;  %v771_v48 = vmul.f32 0.010416667, %v709_v10 }
 0x21a   : > { %v1468_v4 = vpop.eup %1467  ;;  %v818_v22 = vadd.f32 1e-05, %v786_v45 }
 0x21b   : > { %v868_v52 = vmul.f32 %v1468_v4, %v1756_v36  ;;  %v803_v54 = vadd.f32 1e-05, %v771_v48 }
 0x21c   : > { %1477 = vrsqrt.f32 %v818_v22  ;;  %v741_v13 = vpop.xlane.xlu1 %740  ;;  %v719_v57 = vpop.xlane.xlu0 %718 }
 0x21d   : > { %1479 = vrsqrt.f32 %v803_v54  ;;  %v787_v58 = vmul.f32 0.010416667, %v741_v13  ;;  %v776_v24 = vmul.f32 0.010416667, %v719_v57  ;;  %v904_v61 = vmul.f32 %v1917_v50, %v868_v52 }
 0x21e   : > { %v1470_v25 = vpop.eup %1469 }
 0x21f   : > { %v1472_v63 = vpop.eup %1471  ;;  %v869_v56 = vmul.f32 %v1470_v25, %v1764_v43  ;;  %v819_v18 = vadd.f32 1e-05, %v787_v58  ;;  %v808_v15 = vadd.f32 1e-05, %v776_v24  ;;  %v940_v20 = vadd.f32 %v1922_v7, %v904_v61 }
 0x220   : > { %v884_v36 = vmul.f32 %v1472_v63, %v1759_v37  ;;  %v721_v2 = vpop.xlane.xlu1 %720  ;;  %v751_v35 = vpop.xlane.xlu0 %750 }
 0x221   : > { %v905_v9 = vmul.f32 %v1917_v50, %v869_v56  ;;  %1481 = vrsqrt.f32 %v819_v18  ;;  %v777_v28 = vmul.f32 0.010416667, %v721_v2  ;;  %v792_v29 = vmul.f32 0.010416667, %v751_v35 }
 0x222   : > { %v1474_v62 = vpop.eup %1473  ;;  %v920_v34 = vmul.f32 %v1917_v50, %v884_v36  ;;  %1483 = vrsqrt.f32 %v808_v15 }
 0x223   : > { %v1476_v31 = vpop.eup %1475  ;;  %v941_v43 = vadd.f32 %v1922_v7, %v905_v9  ;;  %v885_v16 = vmul.f32 %v1474_v62, %v1774_v55  ;;  %v809_v37 = vadd.f32 1e-05, %v777_v28  ;;  %v824_v40 = vadd.f32 1e-05, %v792_v29 }
 0x224   : > { %v866_v44 = vmul.f32 %v1476_v31, %v1769_v23  ;;  %v753_v10 = vpop.xlane.xlu1 %752  ;;  %v715_v45 = vpop.xlane.xlu0 %714  ;;  %v956_v54 = vadd.f32 %v1922_v7, %v920_v34 }
 0x225   : > { %v1302_v48 = vpack.c.bf16 %v941_v43, %v940_v20  ;;  %v921_v4 = vmul.f32 %v1917_v50, %v885_v16  ;;  %1485 = vrsqrt.f32 %v809_v37  ;;  %v793_v26 = vmul.f32 0.010416667, %v753_v10 }
 0x226   : > { %v1478_v22 = vpop.eup %1477  ;;  %1487 = vrsqrt.f32 %v824_v40  ;;  %v774_v55 = vmul.f32 0.010416667, %v715_v45  ;;  %v902_v57 = vmul.f32 %v1917_v50, %v866_v44 }
 0x227   : > { %v1480_v52 = vpop.eup %1479  ;;  %1374 = vst [vmem:[%s1937_s25 + $0x8] sm:$0xff] %v1302_v48   ;;  %v957_v13 = vadd.f32 %v1922_v7, %v921_v4  ;;  %v825_v23 = vadd.f32 1e-05, %v793_v26  ;;  %v882_v24 = vmul.f32 %v1478_v22, %v1779_v60 }
 0x228   : > { %v867_v58 = vmul.f32 %v1480_v52, %v1789_v38  ;;  %v806_v25 = vadd.f32 1e-05, %v774_v55  ;;  %v717_v61 = vpop.xlane.xlu1 %716  ;;  %v747_v63 = vpop.xlane.xlu0 %746  ;;  %v938_v35 = vadd.f32 %v1922_v7, %v902_v57 }
 0x229   : > { %v1342_v56 = vpack.c.bf16 %v957_v13, %v956_v54  ;;  %1489 = vrsqrt.f32 %v825_v23  ;;  %v775_v18 = vmul.f32 0.010416667, %v717_v61  ;;  %v790_v36 = vmul.f32 0.010416667, %v747_v63 }
 0x22a   : > { %v903_v15 = vmul.f32 %v1917_v50, %v867_v58  ;;  %1491 = vrsqrt.f32 %v806_v25  ;;  %v918_v60 = vmul.f32 %v1917_v50, %v882_v24 }
 0x22b   : > { %v1482_v2 = vpop.eup %1481  ;;  %1382 = vst [vmem:[%s1937_s25 + $0x48] sm:$0xff] %v1342_v56   ;;  %v807_v9 = vadd.f32 1e-05, %v775_v18  ;;  %v822_v62 = vadd.f32 1e-05, %v790_v36 }
 0x22c   : > { %v1484_v28 = vpop.eup %1483  ;;  %v939_v38 = vadd.f32 %v1922_v7, %v903_v15  ;;  %v883_v29 = vmul.f32 %v1482_v2, %v1786_v27  ;;  %v749_v20 = vpop.xlane.xlu1 %748  ;;  %v954_v27 = vadd.f32 %v1922_v7, %v918_v60 }
 0x22d   : > { %v727_v34 = vpop.xlane.xlu0 %726  ;;  %v872_v31 = vmul.f32 %v1484_v28, %v1797_v41  ;;  %1493 = vrsqrt.f32 %v807_v9  ;;  %v791_v43 = vmul.f32 0.010416667, %v749_v20 }
 0x22e   : > { %v780_v16 = vmul.f32 0.010416667, %v727_v34  ;;  %v1297_v37 = vpack.c.bf16 %v939_v38, %v938_v35  ;;  %v919_v40 = vmul.f32 %v1917_v50, %v883_v29  ;;  %1495 = vrsqrt.f32 %v822_v62 }
 0x22f   : > { %v1486_v44 = vpop.eup %1485  ;;  %v908_v10 = vmul.f32 %v1917_v50, %v872_v31  ;;  %v823_v45 = vadd.f32 1e-05, %v791_v43 }
 0x230   : > { %v812_v48 = vadd.f32 1e-05, %v780_v16  ;;  %v1488_v4 = vpop.eup %1487  ;;  %1298 = vst [vmem:[%s1937_s25] sm:$0xff] %v1297_v37   ;;  %v955_v26 = vadd.f32 %v1922_v7, %v919_v40  ;;  %v873_v41 = vmul.f32 %v1486_v44, %v1794_v39  ;;  %v729_v22 = vpop.xlane.xlu1 %728 }
 0x231   : > { %v759_v55 = vpop.xlane.xlu0 %758  ;;  %v888_v52 = vmul.f32 %v1488_v4, %v1809_v47  ;;  %1497 = vrsqrt.f32 %v823_v45  ;;  %v781_v54 = vmul.f32 0.010416667, %v729_v22  ;;  %v944_v24 = vadd.f32 %v1922_v7, %v908_v10 }
 0x232   : > { %v1337_v13 = vpack.c.bf16 %v955_v26, %v954_v27  ;;  %v909_v57 = vmul.f32 %v1917_v50, %v873_v41  ;;  %1499 = vrsqrt.f32 %v812_v48  ;;  %v796_v23 = vmul.f32 0.010416667, %v759_v55 }
 0x233   : > { %v1490_v58 = vpop.eup %1489  ;;  %v813_v25 = vadd.f32 1e-05, %v781_v54  ;;  %v924_v39 = vmul.f32 %v1917_v50, %v888_v52 }
 0x234   : > { %v1492_v61 = vpop.eup %1491  ;;  %1381 = vst [vmem:[%s1937_s25 + $0x40] sm:$0xff] %v1337_v13   ;;  %v945_v63 = vadd.f32 %v1922_v7, %v909_v57  ;;  %v889_v47 = vmul.f32 %v1490_v58, %v1806_v51  ;;  %v828_v56 = vadd.f32 1e-05, %v796_v23  ;;  %v761_v18 = vpop.xlane.xlu1 %760 }
 0x235   : > { %v723_v15 = vpop.xlane.xlu0 %722  ;;  %v870_v36 = vmul.f32 %v1492_v61, %v1817_v53  ;;  %1501 = vrsqrt.f32 %v813_v25  ;;  %v797_v2 = vmul.f32 0.010416667, %v761_v18  ;;  %v960_v51 = vadd.f32 %v1922_v7, %v924_v39 }
 0x236   : > { %v1312_v35 = vpack.c.bf16 %v945_v63, %v944_v24  ;;  %v925_v9 = vmul.f32 %v1917_v50, %v889_v47  ;;  %1503 = vrsqrt.f32 %v828_v56  ;;  %v778_v28 = vmul.f32 0.010416667, %v723_v15 }
 0x237   : > { %v1494_v38 = vpop.eup %1493  ;;  %v906_v60 = vmul.f32 %v1917_v50, %v870_v36  ;;  %v829_v29 = vadd.f32 1e-05, %v797_v2 }
 0x238   : > { %v1496_v62 = vpop.eup %1495  ;;  %1376 = vst [vmem:[%s1937_s25 + $0x18] sm:$0xff] %v1312_v35   ;;  %v961_v20 = vadd.f32 %v1922_v7, %v925_v9  ;;  %v871_v53 = vmul.f32 %v1494_v38, %v1814_v0  ;;  %v810_v34 = vadd.f32 1e-05, %v778_v28  ;;  %v725_v31 = vpop.xlane.xlu1 %724 }
 0x239   : > { %v755_v43 = vpop.xlane.xlu0 %754  ;;  %v886_v16 = vmul.f32 %v1496_v62, %v1827_v59  ;;  %1505 = vrsqrt.f32 %v829_v29  ;;  %v779_v37 = vmul.f32 0.010416667, %v725_v31  ;;  %v942_v48 = vadd.f32 %v1922_v7, %v906_v60 }
 0x23a   : > { %v1352_v40 = vpack.c.bf16 %v961_v20, %v960_v51  ;;  %v907_v44 = vmul.f32 %v1917_v50, %v871_v53  ;;  %1507 = vrsqrt.f32 %v810_v34  ;;  %v794_v10 = vmul.f32 0.010416667, %v755_v43 }
 0x23b   : > { %v1498_v45 = vpop.eup %1497  ;;  %v811_v4 = vadd.f32 1e-05, %v779_v37  ;;  %v922_v26 = vmul.f32 %v1917_v50, %v886_v16 }
 0x23c   : > { %v1500_v27 = vpop.eup %1499  ;;  %1384 = vst [vmem:[%s1937_s25 + $0x58] sm:$0xff] %v1352_v40   ;;  %v943_v0 = vadd.f32 %v1922_v7, %v907_v44  ;;  %v887_v59 = vmul.f32 %v1498_v45, %v1824_v30  ;;  %v826_v41 = vadd.f32 1e-05, %v794_v10  ;;  %v757_v22 = vpop.xlane.xlu1 %756 }
 0x23d   : > { %v735_v55 = vpop.xlane.xlu0 %734  ;;  %v876_v52 = vmul.f32 %v1500_v27, %v1839_v49  ;;  %1509 = vrsqrt.f32 %v811_v4  ;;  %v795_v54 = vmul.f32 0.010416667, %v757_v22  ;;  %v958_v30 = vadd.f32 %v1922_v7, %v922_v26 }
 0x23e   : > { %v1307_v13 = vpack.c.bf16 %v943_v0, %v942_v48  ;;  %v923_v57 = vmul.f32 %v1917_v50, %v887_v59  ;;  %1511 = vrsqrt.f32 %v826_v41  ;;  %v784_v23 = vmul.f32 0.010416667, %v735_v55 }
 0x23f   : > { %v1502_v58 = vpop.eup %1501  ;;  %v912_v24 = vmul.f32 %v1917_v50, %v876_v52  ;;  %v827_v25 = vadd.f32 1e-05, %v795_v54 }
 0x240   : > { %v1504_v61 = vpop.eup %1503  ;;  %1375 = vst [vmem:[%s1937_s25 + $0x10] sm:$0xff] %v1307_v13   ;;  %v959_v63 = vadd.f32 %v1922_v7, %v923_v57  ;;  %v877_v49 = vmul.f32 %v1502_v58, %v1836_v5  ;;  %v816_v39 = vadd.f32 1e-05, %v784_v23  ;;  %v737_v47 = vpop.xlane.xlu1 %736 }
 0x241   : > { %v731_v56 = vpop.xlane.xlu0 %730  ;;  %v892_v18 = vmul.f32 %v1504_v61, %v1847_v6  ;;  %1513 = vrsqrt.f32 %v827_v25  ;;  %v785_v15 = vmul.f32 0.010416667, %v737_v47  ;;  %v948_v28 = vadd.f32 %v1922_v7, %v912_v24 }
 0x242   : > { %v1347_v36 = vpack.c.bf16 %v959_v63, %v958_v30  ;;  %v913_v2 = vmul.f32 %v1917_v50, %v877_v49  ;;  %1515 = vrsqrt.f32 %v816_v39  ;;  %v782_v35 = vmul.f32 0.010416667, %v731_v56 }
 0x243   : > { %v1506_v9 = vpop.eup %1505  ;;  %v817_v38 = vadd.f32 1e-05, %v785_v15  ;;  %v928_v29 = vmul.f32 %v1917_v50, %v892_v18 }
 0x244   : > { %v1508_v60 = vpop.eup %1507  ;;  %1383 = vst [vmem:[%s1937_s25 + $0x50] sm:$0xff] %v1347_v36   ;;  %v949_v5 = vadd.f32 %v1922_v7, %v913_v2  ;;  %v893_v6 = vmul.f32 %v1506_v9, %v1844_v33  ;;  %v814_v62 = vadd.f32 1e-05, %v782_v35  ;;  %v733_v51 = vpop.xlane.xlu1 %732 }
 0x245   : > { %v763_v20 = vpop.xlane.xlu0 %762  ;;  %v874_v53 = vmul.f32 %v1508_v60, %v1857_v8  ;;  %1517 = vrsqrt.f32 %v817_v38  ;;  %v783_v34 = vmul.f32 0.010416667, %v733_v51  ;;  %v964_v33 = vadd.f32 %v1922_v7, %v928_v29 }
 0x246   : > { %v1322_v31 = vpack.c.bf16 %v949_v5, %v948_v28  ;;  %v929_v43 = vmul.f32 %v1917_v50, %v893_v6  ;;  %1519 = vrsqrt.f32 %v814_v62  ;;  %v798_v16 = vmul.f32 0.010416667, %v763_v20 }
 0x247   : > { %v1510_v37 = vpop.eup %1509  ;;  %v910_v40 = vmul.f32 %v1917_v50, %v874_v53  ;;  %v815_v44 = vadd.f32 1e-05, %v783_v34 }
 0x248   : > { %v1512_v10 = vpop.eup %1511  ;;  %1378 = vst [vmem:[%s1937_s25 + $0x28] sm:$0xff] %v1322_v31   ;;  %v965_v45 = vadd.f32 %v1922_v7, %v929_v43  ;;  %v875_v8 = vmul.f32 %v1510_v37, %v1854_v3  ;;  %v830_v48 = vadd.f32 1e-05, %v798_v16  ;;  %v765_v4 = vpop.xlane.xlu1 %764 }
 0x249   : > { %v767_v27 = vpop.xlane.xlu0 %766  ;;  %v890_v0 = vmul.f32 %v1512_v10, %v1869_v42  ;;  %1521 = vrsqrt.f32 %v815_v44  ;;  %v799_v26 = vmul.f32 0.010416667, %v765_v4  ;;  %v946_v52 = vadd.f32 %v1922_v7, %v910_v40 }
 0x24a   : > { %v1362_v59 = vpack.c.bf16 %v965_v45, %v964_v33  ;;  %v911_v41 = vmul.f32 %v1917_v50, %v875_v8  ;;  %1523 = vrsqrt.f32 %v830_v48  ;;  %v800_v22 = vmul.f32 0.010416667, %v767_v27 }
 0x24b   : > { %v1514_v55 = vpop.eup %1513  ;;  %v831_v54 = vadd.f32 1e-05, %v799_v26  ;;  %v926_v57 = vmul.f32 %v1917_v50, %v890_v0 }
 0x24c   : > { %v1516_v13 = vpop.eup %1515  ;;  %1386 = vst [vmem:[%s1937_s25 + $0x68] sm:$0xff] %v1362_v59   ;;  %v947_v3 = vadd.f32 %v1922_v7, %v911_v41  ;;  %v891_v42 = vmul.f32 %v1514_v55, %v1866_v11  ;;  %v832_v23 = vadd.f32 1e-05, %v800_v22  ;;  %v769_v58 = vpop.xlane.xlu1 %768 }
 0x24d   : > { %v880_v24 = vmul.f32 %v1516_v13, %v1877_v12  ;;  %1525 = vrsqrt.f32 %v831_v54  ;;  %v801_v25 = vmul.f32 0.010416667, %v769_v58  ;;  %v962_v47 = vadd.f32 %v1922_v7, %v926_v57 }
 0x24e   : > { %v1317_v61 = vpack.c.bf16 %v947_v3, %v946_v52  ;;  %v927_v30 = vmul.f32 %v1917_v50, %v891_v42  ;;  %1527 = vrsqrt.f32 %v832_v23 }
 0x24f   : > { %v1518_v63 = vpop.eup %1517  ;;  %v833_v49 = vadd.f32 1e-05, %v801_v25  ;;  %v916_v11 = vmul.f32 %v1917_v50, %v880_v24 }
 0x250   : > { %v1520_v39 = vpop.eup %1519  ;;  %1377 = vst [vmem:[%s1937_s25 + $0x20] sm:$0xff] %v1317_v61   ;;  %v963_v56 = vadd.f32 %v1922_v7, %v927_v30  ;;  %v881_v18 = vmul.f32 %v1518_v63, %v1874_v32 }
 0x251   : > { %v878_v12 = vmul.f32 %v1520_v39, %v1887_v14  ;;  %1529 = vrsqrt.f32 %v833_v49  ;;  %v952_v9 = vadd.f32 %v1922_v7, %v916_v11 }
 0x252   : > { %v1357_v15 = vpack.c.bf16 %v963_v56, %v962_v47  ;;  %v917_v36 = vmul.f32 %v1917_v50, %v881_v18 }
 0x253   : > { %v1522_v2 = vpop.eup %1521  ;;  %v914_v38 = vmul.f32 %v1917_v50, %v878_v12 }
 0x254   : > { %v1524_v35 = vpop.eup %1523  ;;  %1385 = vst [vmem:[%s1937_s25 + $0x60] sm:$0xff] %v1357_v15   ;;  %v953_v28 = vadd.f32 %v1922_v7, %v917_v36  ;;  %v879_v60 = vmul.f32 %v1522_v2, %v1884_v1 }
 0x255   : > { %v894_v32 = vmul.f32 %v1524_v35, %v1899_v21  ;;  %v950_v62 = vadd.f32 %v1922_v7, %v914_v38 }
 0x256   : > { %v1332_v14 = vpack.c.bf16 %v953_v28, %v952_v9  ;;  %v915_v5 = vmul.f32 %v1917_v50, %v879_v60 }
 0x257   : > { %v1526_v29 = vpop.eup %1525  ;;  %v930_v20 = vmul.f32 %v1917_v50, %v894_v32 }
 0x258   : > { %v1528_v6 = vpop.eup %1527  ;;  %1380 = vst [vmem:[%s1937_s25 + $0x38] sm:$0xff] %v1332_v14   ;;  %v951_v51 = vadd.f32 %v1922_v7, %v915_v5  ;;  %v895_v53 = vmul.f32 %v1526_v29, %v1896_v17 }
 0x259   : > { %v896_v1 = vmul.f32 %v1528_v6, %v1907_v19  ;;  %v966_v43 = vadd.f32 %v1922_v7, %v930_v20 }
 0x25a   : > { %v1327_v34 = vpack.c.bf16 %v951_v51, %v950_v62  ;;  %v931_v21 = vmul.f32 %v1917_v50, %v895_v53 }
 0x25b   : > { %v1530_v31 = vpop.eup %1529  ;;  %v932_v37 = vmul.f32 %v1917_v50, %v896_v1 }
 0x25c   : > { %1379 = vst [vmem:[%s1937_s25 + $0x30] sm:$0xff] %v1327_v34   ;;  %v967_v16 = vadd.f32 %v1922_v7, %v931_v21  ;;  %v897_v40 = vmul.f32 %v1530_v31, %v1904_v46 }
 0x25d   : > { %v968_v17 = vadd.f32 %v1922_v7, %v932_v37 }
 0x25e   : > { %v1367_v44 = vpack.c.bf16 %v967_v16, %v966_v43  ;;  %v933_v10 = vmul.f32 %v1917_v50, %v897_v40 }
 0x260   : > { %1387 = vst [vmem:[%s1937_s25 + $0x70] sm:$0xff] %v1367_v44   ;;  %v969_v19 = vadd.f32 %v1922_v7, %v933_v10 }
 0x262   : > { %v1372_v33 = vpack.c.bf16 %v969_v19, %v968_v17 }
 0x264   : > { %1388 = vst [vmem:[%s1937_s25 + $0x78] sm:$0xff] %v1372_v33  }
 0x265 PF: > { %s13_s12 = sadd.s32 1, %s1537_s12  }
 0x266   : > { %p10_p4 = scmp.ge.s32.totalorder %s13_s12, 4  }
 0x268   :  { %12 = sbr.rel (!%p10_p4) target bundleno = 1 (0x1), region = 62 }

</bundles_post_ra>
